<compile_context>
chip_gen: v5e
topology: v5e:2x2
jax: 0.10.0
libtpu: 0.0.40
codegen_flags: <defaults>
</compile_context>

<pallas_src>
import jax
import jax.numpy as jnp
from jax.experimental import pallas as pl
from jax.experimental.pallas import tpu as pltpu


def _round_up(x: int, m: int) -> int:
    return (x + m - 1) // m * m


def _cdiv(a: int, b: int) -> int:
    return (a + b - 1) // b


def _sublane(dtype) -> int:
    # Rows per sublane-packed tile: 8 (32-bit), 16 (16-bit), 32 (8-bit).
    return {4: 8, 2: 16, 1: 32}.get(jnp.dtype(dtype).itemsize, 8)


def _vmem_limit_bytes() -> int:
    # ~3/4 of physical VMEM: ~96 MiB on v5e/v6e (128 MiB), ~48 MiB on v7x (64 MiB).
    cap = 128 * 1024 * 1024
    try:
        info = pltpu.get_tpu_info()
        cap = int(getattr(info, "vmem_capacity_bytes", cap)) or cap
    except Exception:
        pass
    return int(min(cap * 3 // 4, 100 * 1024 * 1024))


# ---------------------------------------------------------------------------
# Kernels
# ---------------------------------------------------------------------------

def _linear_kernel_single(x_ref, w_ref, b_ref, o_ref):
    # Whole-K contraction per (i, j) tile: no accumulator scratch, no pl.when.
    # x_ref: [tm, Kp]   w_ref: [Kp, tn] (pre-transposed)   b_ref: [1, tn]
    xv = x_ref[...]
    wv = w_ref[...]
    if xv.dtype != wv.dtype:
        xv = xv.astype(wv.dtype)          # bf16 MXU feed when weight is bf16
    acc = jnp.dot(xv, wv, preferred_element_type=jnp.float32)
    o_ref[...] = (acc + b_ref[...].astype(jnp.float32)).astype(o_ref.dtype)


def _linear_kernel_acc(x_ref, w_ref, b_ref, o_ref, acc_ref):
    # Tiled-K variant with an f32 VMEM accumulator (K innermost, "arbitrary").
    k = pl.program_id(2)

    @pl.when(k == 0)
    def _():
        acc_ref[...] = jnp.zeros_like(acc_ref)

    xv = x_ref[...]
    wv = w_ref[...]
    if xv.dtype != wv.dtype:
        xv = xv.astype(wv.dtype)
    acc_ref[...] += jnp.dot(xv, wv, preferred_element_type=jnp.float32)

    @pl.when(k == pl.num_programs(2) - 1)
    def _():
        o_ref[...] = (acc_ref[...] + b_ref[...].astype(jnp.float32)).astype(o_ref.dtype)


# ---------------------------------------------------------------------------
# One-time parameter preparation (out of the per-call hot path)
# ---------------------------------------------------------------------------

def prepare_linear_params(weight, bias, *, compute_dtype=None,
                          tn_max=512, tk_max=1024):
    """Re-layout PyTorch-style Linear params once for the Pallas kernel.

    weight: [N, K] (out_features, in_features); bias: [N].
    Transposes to [K, N], pads to tile boundaries, optionally casts the weight
    to `compute_dtype` (e.g. bf16) — all once at init, never per forward call.
    """
    N, K = weight.shape
    assert bias.shape == (N,), "bias shape mismatch"
    if compute_dtype is None:
        compute_dtype = weight.dtype
    compute_dtype = jnp.dtype(compute_dtype)

    tn = min(tn_max, _round_up(N, 128))     # lane-dense output tiles
    tk = min(tk_max, _round_up(K, 128))
    Np = _round_up(N, tn)
    Kp = _round_up(K, tk)

    w_kn = jnp.transpose(weight).astype(compute_dtype)        # [K, N]
    if (Kp, Np) != (K, N):
        w_kn = jnp.pad(w_kn, ((0, Kp - K), (0, Np - N)))
    b_pad = bias if Np == N else jnp.pad(bias, (0, Np - N))
    b2d = b_pad.reshape(1, Np)

    return dict(w_kn=w_kn, b2d=b2d, N=N, K=K, Np=Np, Kp=Kp,
                tn=tn, tk=tk, compute_dtype=compute_dtype)


# ---------------------------------------------------------------------------
# Forward pass
# ---------------------------------------------------------------------------

def linear_forward(x, params, *, tm_max=512):
    """y = x @ weight.T + bias with params from prepare_linear_params."""
    N, K, Np, Kp = params["N"], params["K"], params["Np"], params["Kp"]
    w_kn, b2d = params["w_kn"], params["b2d"]
    tn, tk = params["tn"], params["tk"]
    cdt = params["compute_dtype"]

    orig_shape = x.shape
    assert orig_shape[-1] == K, "input_features mismatch"
    x2d = x.reshape(-1, K)
    M = x2d.shape[0]

    sub = _sublane(x.dtype)
    tm = min(tm_max, _round_up(M, sub))

    vmem_limit = _vmem_limit_bytes()
    x_item = jnp.dtype(x.dtype).itemsize
    w_item = cdt.itemsize
    o_item = jnp.dtype(x.dtype).itemsize
    b_item = jnp.dtype(b2d.dtype).itemsize

    def step_bytes(tm_, tn_, tk_):
        # double-buffered x/w/bias/out blocks + f32 accumulator scratch
        return (2 * (tm_ * tk_ * x_item + tk_ * tn_ * w_item + tn_ * b_item)
                + 2 * tm_ * tn_ * o_item + tm_ * tn_ * 4)

    # Shrink tiles (tm first) if the per-step footprint would blow the budget.
    while step_bytes(tm, tn, tk) > vmem_limit * 9 // 10:
        if tm > sub:
            tm = _round_up(_cdiv(tm, 2), sub)
        elif tn >= 256 and tn % 256 == 0:
            tn //= 2
        else:
            break

    Mp = _round_up(M, tm)

    # Megacore (v7x): make sure the parallel grid has >= 2 steps when possible.
    if (Mp // tm) * (Np // tn) < 2:
        if tn >= 256 and tn % 256 == 0:
            tn //= 2
        elif tm >= 2 * sub:
            tm = _round_up(_cdiv(tm, 2), sub)
            Mp = _round_up(M, tm)

    # Pad activations (cheap vs. the weight, which is pre-padded at init).
    xp = x2d if (Mp == M and Kp == K) else jnp.pad(x2d, ((0, Mp - M), (0, Kp - K)))

    grid_m, grid_n, grid_k = Mp // tm, Np // tn, Kp // tk

    cost = pl.CostEstimate(
        flops=2 * Mp * Np * Kp,
        transcendentals=0,
        bytes_accessed=(xp.size * x_item * grid_n          # x re-read per N tile
                        + w_kn.size * w_item * grid_m      # w re-read per M tile
                        + b2d.size * b_item * grid_m
                        + Mp * Np * o_item),
    )

    if grid_k == 1:
        # K fits in one tile: single dot per (i, j), no accumulator, no pl.when.
        out_padded = pl.pallas_call(
            _linear_kernel_single,
            out_shape=jax.ShapeDtypeStruct((Mp, Np), x.dtype),
            grid_spec=pltpu.PrefetchScalarGridSpec(
                num_scalar_prefetch=0,
                grid=(grid_m, grid_n),
                in_specs=[
                    pl.BlockSpec((tm, Kp), lambda i, j: (i, 0)),   # x
                    pl.BlockSpec((Kp, tn), lambda i, j: (0, j)),   # w [K, N]
                    pl.BlockSpec((1, tn), lambda i, j: (0, j)),    # bias
                ],
                out_specs=pl.BlockSpec((tm, tn), lambda i, j: (i, j)),
            ),
            compiler_params=pltpu.CompilerParams(
                dimension_semantics=("parallel", "parallel"),
                vmem_limit_bytes=vmem_limit,
            ),
            cost_estimate=cost,
        )(xp, w_kn, b2d)
    else:
        out_padded = pl.pallas_call(
            _linear_kernel_acc,
            out_shape=jax.ShapeDtypeStruct((Mp, Np), x.dtype),
            grid_spec=pltpu.PrefetchScalarGridSpec(
                num_scalar_prefetch=0,
                grid=(grid_m, grid_n, grid_k),
                in_specs=[
                    pl.BlockSpec((tm, tk), lambda i, j, k: (i, k)),   # x
                    pl.BlockSpec((tk, tn), lambda i, j, k: (k, j)),   # w [K, N]
                    pl.BlockSpec((1, tn), lambda i, j, k: (0, j)),    # bias
                ],
                out_specs=pl.BlockSpec((tm, tn), lambda i, j, k: (i, j)),
                scratch_shapes=[pltpu.VMEM((tm, tn), jnp.float32)],
            ),
            compiler_params=pltpu.CompilerParams(
                dimension_semantics=("parallel", "parallel", "arbitrary"),
                vmem_limit_bytes=vmem_limit,
            ),
            cost_estimate=cost,
        )(xp, w_kn, b2d)

    y = out_padded[:M, :N]
    return y.reshape(orig_shape[:-1] + (N,))


if __name__ == "__main__":
    # Small shapes consistent with the module: Linearmodule(32 -> 64), batch 8.
    batch, in_features, out_features = 8, 32, 64

    key = jax.random.PRNGKey(0)
    kx, kw, kb = jax.random.split(key, 3)

    # Parameter init mirroring nn.init.uniform_(-0.01, 0.01).
    weight = jax.random.uniform(
        kw, (out_features, in_features), jnp.float32, minval=-0.01, maxval=0.01)
    bias = jax.random.uniform(
        kb, (out_features,), jnp.float32, minval=-0.01, maxval=0.01)
    x = jax.random.normal(kx, (batch, in_features), jnp.float32)

    # Exact (f32) path: matches PyTorch numerics.
    params_f32 = prepare_linear_params(weight, bias)

    y = linear_forward(x, params_f32)
    jax.block_until_ready(y)
    y_ref = x @ weight.T + bias
    assert y.shape == (batch, out_features)
    assert jnp.allclose(y, y_ref, atol=1e-5, rtol=1e-5), "2-D mismatch vs reference"

    # 3-D input (torch.matmul broadcasts over leading dims).
    x3 = jax.random.normal(jax.random.PRNGKey(1), (2, batch, in_features), jnp.float32)
    y3 = linear_forward(x3, params_f32)
    jax.block_until_ready(y3)
    y3_ref = jnp.einsum("bmk,nk->bmn", x3, weight) + bias
    assert y3.shape == (2, batch, out_features)
    assert jnp.allclose(y3, y3_ref, atol=1e-5, rtol=1e-5), "3-D mismatch vs reference"

    # bf16 MXU path: weight stored bf16 once at init (half the weight HBM bytes,
    # bf16 MXU peak on v6e/v7x); f32 accumulation inside the kernel.
    params_bf16 = prepare_linear_params(weight, bias, compute_dtype=jnp.bfloat16)
    yb = linear_forward(x, params_bf16)
    jax.block_until_ready(yb)
    assert jnp.allclose(yb.astype(jnp.float32), y_ref, atol=5e-3, rtol=5e-2), \
        "bf16 path mismatch vs reference"

    print("KERNEL_OK")
</pallas_src>

<mosaic_0001>
module attributes {stable_mosaic.version = 11 : i64} {
  func.func @_linear_kernel_single(%arg0: i32, %arg1: i32, %arg2: memref<8x128xf32, #tpu.memory_space<vmem>>, %arg3: memref<128x128xf32, #tpu.memory_space<vmem>>, %arg4: memref<1x128xf32, #tpu.memory_space<vmem>>, %arg5: memref<8x128xf32, #tpu.memory_space<vmem>>) attributes {dimension_semantics = [#tpu.dimension_semantics<parallel>, #tpu.dimension_semantics<parallel>], iteration_bounds = array<i64: 1, 1>, scalar_prefetch = 0 : i64, scratch_operands = 0 : i64, tpu.core_type = #tpu.core_type<tc>, window_params = [{transform_indices = @transform_0, window_bounds = array<i64: 8, 128>}, {transform_indices = @transform_1, window_bounds = array<i64: 128, 128>}, {transform_indices = @transform_2, window_bounds = array<i64: 1, 128>}, {transform_indices = @transform_3, window_bounds = array<i64: 8, 128>}]} {
    %c0 = arith.constant 0 : index
    %c0_0 = arith.constant 0 : index
    %0 = vector.load %arg2[%c0, %c0_0] : memref<8x128xf32, #tpu.memory_space<vmem>>, vector<8x128xf32>
    %c0_1 = arith.constant 0 : index
    %c0_2 = arith.constant 0 : index
    %1 = vector.load %arg3[%c0_1, %c0_2] : memref<128x128xf32, #tpu.memory_space<vmem>>, vector<128x128xf32>
    %cst = arith.constant dense<0.000000e+00> : vector<8x128xf32>
    %2 = tpu.matmul %0, %1, %cst {dimension_numbers = #tpu.dot_dimension_numbers<[1], [0], [0], [1], [0, 0, 1, 1], [], []>} : vector<8x128xf32>, vector<128x128xf32>, vector<8x128xf32> -> vector<8x128xf32>
    %c0_3 = arith.constant 0 : index
    %c0_4 = arith.constant 0 : index
    %3 = vector.load %arg4[%c0_3, %c0_4] : memref<1x128xf32, #tpu.memory_space<vmem>>, vector<1x128xf32>
    %4 = vector.broadcast %3 : vector<1x128xf32> to vector<8x128xf32>
    %5 = arith.addf %2, %4 : vector<8x128xf32>
    %c0_5 = arith.constant 0 : index
    %c0_6 = arith.constant 0 : index
    %6 = vector.load %arg5[%c0_5, %c0_6] : memref<8x128xf32, #tpu.memory_space<vmem>>, vector<8x128xf32>
    tpu.vector_store %arg5[%c0_5, %c0_6], %5 {strides = array<i32>} : memref<8x128xf32, #tpu.memory_space<vmem>>, vector<8x128xf32>,
    return
  }
  func.func @transform_0(%arg0: i32, %arg1: i32) -> (i32, i32) {
    %c0_i32 = arith.constant 0 : i32
    %c0_i32_0 = arith.constant 0 : i32
    return %arg0, %c0_i32 : i32, i32
  }
  func.func @transform_1(%arg0: i32, %arg1: i32) -> (i32, i32) {
    %c0_i32 = arith.constant 0 : i32
    %c0_i32_0 = arith.constant 0 : i32
    return %c0_i32, %arg1 : i32, i32
  }
  func.func @transform_2(%arg0: i32, %arg1: i32) -> (i32, i32) {
    %c0_i32 = arith.constant 0 : i32
    %c0_i32_0 = arith.constant 0 : i32
    return %c0_i32, %arg1 : i32, i32
  }
  func.func @transform_3(%arg0: i32, %arg1: i32) -> (i32, i32) {
    %c0_i32 = arith.constant 0 : i32
    return %arg0, %arg1 : i32, i32
  }
}

</mosaic_0001>

<bundles_post_ra>
// kernel: tpu_custom_call.1
= control target key start
LH: loop header
LB: loop body
LE: loop exit
PB: predicated region body
PF: predicated region fallthrough
CT: control target
= control target key end

     0   :  { %8 = vsyncpa [#allocation3], 0  ;;  %s226_s0 = inlined_call_operand.hbm [shape: f32[8,128], index: 0, kind: input, shape index: {}]   ;;  %s227_s1 = inlined_call_operand.hbm [shape: f32[128,128], index: 1, kind: input, shape index: {}]   ;;  %s228_s2 = inlined_call_operand.vmem [shape: f32[1,128], index: 2, kind: input, shape index: {}]   ;;  %s229_s3 = inlined_call_operand.hbm [shape: f32[8,128], index: 3, kind: output, shape index: {}]  }
   0x1   :  { %9 = vsyncpa [#allocation6], 0 }
   0x2   :  { %10 = vsyncpa [#allocation4], 0  ;;  %s16_s14 = sshll.u32 %s226_s0, 4  ;;  %s189_s15 = smov [#allocation2]   ;;  %s17_s14 = int_to_ptr.hbm [resolvable:$true] %s16_s14 }
   0x3   :  { %s18_s16 = sshll.u32 %s189_s15, 4  ;;  %s26_s19 = sshll.u32 %s227_s1, 4  ;;  %s19_s16 = int_to_ptr.vmem [resolvable:$true] %s18_s16  ;;  %s27_s19 = int_to_ptr.hbm [resolvable:$true] %s26_s19 }
   0x4   :  { %21 = dma.hbm_to_vmem [thread:$0]  %s17_s14, 128, %s19_s16, [#allocation3]  }
   0x5   :  { %s190_s20 = smov [#allocation5]   ;;  %s191_s22 = smov 128  }
   0x6   :  { %s28_s21 = sshll.u32 %s190_s20, 4  ;;  %s192_s23 = smov 8   ;;  %s29_s21 = int_to_ptr.vmem [resolvable:$true] %s28_s21 }
   0x7   :  { %34 = dma.hbm_to_vmem [thread:$0]  %s27_s19, 2048, %s29_s21, [#allocation6], %s191_s22, %s191_s22, %s192_s23  }
   0x8   :  { %183 = dma.done.wait [#allocation3], 128  }
   0x9   :  { %184 = vsyncadd [#allocation3], 4294967168 }
   0xa   :  { %185 = dma.done.wait [#allocation6], 2048  }
   0xb   :  { %186 = vsyncadd [#allocation6], 4294965248  ;;  %v61_v0 = vld [vmem:[#allocation5 + $0x78] sm:$0xff]  ;;  %v60_v1 = vld [vmem:[#allocation5 + $0x70] sm:$0xff]  ;;  %s193_s24 = smov [#allocation7]   ;;  %s94_s28 = sshll.u32 %s229_s3, 4  ;;  %s95_s28 = int_to_ptr.hbm [resolvable:$true] %s94_s28 }
   0xc   :  { %66 = vmatpush.msra.mxu0 %v61_v0  ;;  %v59_v2 = vld [vmem:[#allocation5 + $0x68] sm:$0xff]  ;;  %v58_v3 = vld [vmem:[#allocation5 + $0x60] sm:$0xff]  ;;  %v57_v4 = vld [vmem:[#allocation5 + $0x58] sm:$0xff]  ;;  %s92_s25 = sshll.u32 %s193_s24, 4  ;;  %s93_s25 = int_to_ptr.vmem [resolvable:$true] %s92_s25 }
   0xd   :  { %v56_v5 = vld [vmem:[#allocation5 + $0x50] sm:$0xff]  ;;  %v55_v6 = vld [vmem:[#allocation5 + $0x48] sm:$0xff]  ;;  %v54_v7 = vld [vmem:[#allocation5 + $0x40] sm:$0xff] }
   0xe   :  { %67 = vmatpush.msra.mxu0 %v60_v1  ;;  %v53_v8 = vld [vmem:[#allocation5 + $0x38] sm:$0xff]  ;;  %v52_v9 = vld [vmem:[#allocation5 + $0x30] sm:$0xff]  ;;  %v51_v10 = vld [vmem:[#allocation5 + $0x28] sm:$0xff] }
   0xf   :  { %v50_v11 = vld [vmem:[#allocation5 + $0x20] sm:$0xff]  ;;  %v49_v12 = vld [vmem:[#allocation5 + $0x18] sm:$0xff]  ;;  %v48_v13 = vld [vmem:[#allocation5 + $0x10] sm:$0xff] }
  0x10   :  { %68 = vmatpush.msra.mxu0 %v59_v2  ;;  %v47_v14 = vld [vmem:[#allocation5 + $0x8] sm:$0xff]  ;;  %v46_v15 = vld [vmem:[#allocation5] sm:$0xff]  ;;  %v45_v16 = vld [vmem:[#allocation2] sm:$0xff] }
  0x11   :  { %v110_v17 = vld [vmem:[%s228_s2] ss:$0 sm:$0xff] }
  0x12   :  { %69 = vmatpush.msra.mxu0 %v58_v3 }
  0x14   :  { %70 = vmatpush.msra.mxu0 %v57_v4 }
  0x16   :  { %71 = vmatpush.msra.mxu0 %v56_v5 }
  0x18   :  { %72 = vmatpush.msra.mxu0 %v55_v6 }
  0x1a   :  { %73 = vmatpush.msra.mxu0 %v54_v7 }
  0x1c   :  { %74 = vmatpush.msra.mxu0 %v53_v8 }
  0x1e   :  { %75 = vmatpush.msra.mxu0 %v52_v9 }
  0x20   :  { %76 = vmatpush.msra.mxu0 %v51_v10 }
  0x22   :  { %77 = vmatpush.msra.mxu0 %v50_v11 }
  0x24   :  { %78 = vmatpush.msra.mxu0 %v49_v12 }
  0x26   :  { %79 = vmatpush.msra.mxu0 %v48_v13 }
  0x28   :  { %80 = vmatpush.msra.mxu0 %v47_v14 }
  0x2a   :  { %81 = vmatpush.msra.mxu0 %v46_v15 }
  0x2b   :  { %82 = vmatmul.f32.vlgmr.msra.gmra.mxu0 %v45_v16 }
  0xa8   :  { %v83_v18 = vpop.f32.mrf.mxu0 }
  0xa9   :  { %v84_v19 = vadd.f32 %v110_v17, %v83_v18 }
  0xab   :  { %86 = vst [vmem:[#allocation7] sm:$0xff] %v84_v19 }
  0xac   :  { %97 = dma.vmem_to_hbm [thread:$0]  %s93_s25, 128, %s95_s28, [#allocation4]  }
  0xad   :  { %187 = dma.done.wait [#allocation4], 128  }
  0xae   :  { %188 = vsyncadd [#allocation4], 4294967168 }
  0xaf   :  { %102 = vsyncpa [#allocation3], 1 }
  0xb0   :  { %103 = vsyncpa [#allocation6], 1 }
  0xb1   :  { %104 = vsyncpa [#allocation4], 1 }

</bundles_post_ra>
